<compile_context>
chip_gen: v7x
topology: tpu7x:2x2x1
jax: 0.10.0
libtpu: 0.0.40
codegen_flags: <defaults>
</compile_context>

<pallas_src>
import functools

import jax
import jax.numpy as jnp
from jax.experimental import pallas as pl
from jax.experimental.pallas import tpu as pltpu


_MASK_FILL = -10000.0
_GROUP = 8  # f32 sublane quantum: accumulator holds 8 partial rows per column

# sublane quantum per element byte-width (f32 -> 8, bf16 -> 16, int8/fp8 -> 32)
_SUBLANE = {4: 8, 2: 16, 1: 32}


def _masked_max_kernel(x_ref, m_ref, o_ref, acc_ref, *, grouped):
    """One (batch-tile, hidden-tile) output block; grid axis 2 walks the sequence.

    grouped=True : acc is (tb, 8, th); each sequence step does only vreg-wise VPU
                   maxima, the single 8-way cross-sublane reduce runs at finalize.
    grouped=False: (ts not a multiple of 8) acc is (tb, th); per-step reduce.
    """
    s_idx = pl.program_id(2)

    @pl.when(s_idx == 0)
    def _init():
        # -inf identity: masked positions contribute -10000 via the where, so the
        # result matches torch.max over the masked tensor (fully-masked -> -10000).
        acc_ref[...] = jnp.full_like(acc_ref, -jnp.inf)

    x = x_ref[...].astype(jnp.float32)            # (tb, ts, th) f32 compute (exact)
    m = m_ref[...].astype(jnp.float32)            # (tb, ts, 1)  int8 mask -> f32
    masked = jnp.where(m == 0.0, jnp.float32(_MASK_FILL), x)
    tb, ts, th = masked.shape

    if grouped:
        g = masked.reshape(tb, ts // _GROUP, _GROUP, th)   # sublane-aligned regroup
        acc_ref[...] = jnp.maximum(acc_ref[...], jnp.max(g, axis=1))
    else:
        acc_ref[...] = jnp.maximum(acc_ref[...], jnp.max(masked, axis=1))

    @pl.when(s_idx == pl.num_programs(2) - 1)
    def _finalize():
        if grouped:
            o_ref[...] = jnp.max(acc_ref[...], axis=1).astype(o_ref.dtype)
        else:
            o_ref[...] = acc_ref[...].astype(o_ref.dtype)


def _pick_tile(dim, preferred, quantum):
    """Largest tile <= max(preferred, quantum) that is a multiple of `quantum` and
    divides `dim`.  Falls back to the full dim (always a legal block extent)."""
    preferred = max(preferred, quantum)
    if dim <= preferred:
        return dim
    t = (preferred // quantum) * quantum
    while t >= quantum:
        if dim % t == 0:
            return t
        t -= quantum
    return dim


def _vmem_capacity_bytes():
    try:
        return int(pltpu.get_tpu_info().vmem_capacity_bytes)
    except Exception:
        return None


def max_pooling(last_hidden_state, attention_mask, *,
                block_b=None, block_s=None, block_h=None):
    """Pallas TPU implementation of the MaxPooling module forward pass."""
    B, S, H_in = last_hidden_state.shape
    x = last_hidden_state                              # native dtype, no wrapper upcast
    out_dtype = x.dtype
    x_itemsize = jnp.dtype(x.dtype).itemsize
    o_itemsize = jnp.dtype(out_dtype).itemsize
    sub_x = _SUBLANE.get(x_itemsize, 8)
    sub_o = _SUBLANE.get(o_itemsize, 8)

    # int8 mask in (B, S, 1): S on sublanes, lane-broadcast against H inside the
    # kernel; 4x smaller lane-padded VMEM buffer / HBM re-read than an f32 mask.
    mask = (attention_mask != 0).astype(jnp.int8).reshape(B, S, 1)

    # Pad H to a lane multiple so every output block is lane-dense (no vst.msk).
    H = H_in
    if H % 128 != 0:
        H = ((H + 127) // 128) * 128
        x = jnp.pad(x, ((0, 0), (0, 0), (0, H - H_in)))

    # ---------------- VMEM budget (leave headroom; v7x has only 64 MiB) ----------
    cap = _vmem_capacity_bytes()
    if cap is None:
        vmem_limit = 48 * 1024 * 1024
        small_vmem = True                               # unknown: be conservative
    else:
        small_vmem = cap <= 80 * 1024 * 1024            # v7x-class VMEM
        vmem_limit = min(max(cap - 16 * 1024 * 1024, 32 * 1024 * 1024),
                         96 * 1024 * 1024)

    # ts is shared by the x block (sublane quantum of x dtype) and the int8 mask
    # block (sublane quantum 32); use the stricter quantum.
    ts_quantum = max(sub_x, _SUBLANE[1], 8)

    # ---------------- default tiles ----------------------------------------------
    tb = block_b if block_b is not None else _pick_tile(B, max(8, sub_o), sub_o)

    if block_h is not None:
        th = block_h
    elif small_vmem:
        # v7x: bias toward a wide hidden tile -> fully contiguous DMA rows.
        h_full = 1024 if x_itemsize >= 4 else 2048
        th = H if H <= h_full else _pick_tile(H, 512, 128)
    else:
        # v5e / v6e: 128 MiB VMEM -> larger tiles.
        th = _pick_tile(H, 512 if x_itemsize >= 4 else 1024, 128)

    if block_s is not None:
        ts = block_s
    else:
        ts = _pick_tile(S, 256 if small_vmem else 1024, ts_quantum)

    # Shrink ts (then th) until double-buffered tiles fit the budget; this also
    # guards the full-dim fallbacks (non-divisible B/S) from blowing past VMEM.
    def _vmem_use(tb_, ts_, th_):
        x_blk = tb_ * ts_ * th_ * x_itemsize
        m_blk = tb_ * ((ts_ + 31) // 32) * 32 * 128     # int8, sublane/lane padded
        o_blk = tb_ * th_ * o_itemsize
        acc = tb_ * _GROUP * th_ * 4
        return 2 * (x_blk + m_blk + o_blk) + acc

    budget = int(vmem_limit * 0.8)
    if block_s is None:
        pref = ts
        while _vmem_use(tb, ts, th) > budget and pref > ts_quantum:
            pref = max(pref // 2, ts_quantum)
            ts = _pick_tile(S, pref, ts_quantum)
    if block_h is None:
        pref = th
        while _vmem_use(tb, ts, th) > budget and pref > 128:
            pref = max(pref // 2, 128)
            th = _pick_tile(H, pref, 128)

    # v7x: make sure both TensorCores get work on the ("parallel","parallel") axes.
    if small_vmem and block_b is None and block_h is None:
        if (B // tb) * (H // th) < 2:
            if th % 256 == 0:
                th //= 2
            elif tb % (2 * sub_o) == 0:
                tb //= 2

    assert B % tb == 0 and S % ts == 0 and H % th == 0

    grouped = (ts % _GROUP) == 0
    grid = (B // tb, H // th, S // ts)

    cost = pl.CostEstimate(
        flops=2 * B * S * H,                            # compare + max per element
        transcendentals=0,
        bytes_accessed=B * S * H * x_itemsize + (H // th) * B * S + B * H * o_itemsize,
    )

    acc_shape = (tb, _GROUP, th) if grouped else (tb, th)
    kernel = functools.partial(_masked_max_kernel, grouped=grouped)

    out = pl.pallas_call(
        kernel,
        out_shape=jax.ShapeDtypeStruct((B, H), out_dtype),
        grid_spec=pltpu.PrefetchScalarGridSpec(
            num_scalar_prefetch=0,
            grid=grid,
            in_specs=[
                pl.BlockSpec((tb, ts, th), lambda b, h, s: (b, s, h)),
                pl.BlockSpec((tb, ts, 1), lambda b, h, s: (b, s, 0)),
            ],
            out_specs=pl.BlockSpec((tb, th), lambda b, h, s: (b, h)),
            scratch_shapes=[pltpu.VMEM(acc_shape, jnp.float32)],
        ),
        compiler_params=pltpu.CompilerParams(
            dimension_semantics=("parallel", "parallel", "arbitrary"),
            vmem_limit_bytes=vmem_limit,
        ),
        cost_estimate=cost,
    )(x, mask)

    if H != H_in:
        out = out[:, :H_in]
    return out


def _reference(last_hidden_state, attention_mask):
    m = attention_mask.astype(jnp.float32)[:, :, None]
    emb = jnp.where(m == 0.0, jnp.float32(_MASK_FILL),
                    last_hidden_state.astype(jnp.float32))
    return jnp.max(emb, axis=1).astype(last_hidden_state.dtype)


if __name__ == "__main__":
    def make_inputs(key, B, S, H, dtype):
        k1, k2 = jax.random.split(key)
        x = jax.random.normal(k1, (B, S, H), dtype=jnp.float32).astype(dtype)
        lengths = jax.random.randint(k2, (B,), 1, S + 1)
        mask = (jnp.arange(S)[None, :] < lengths[:, None]).astype(jnp.int32)
        return x, mask

    # 1) tiny shape from the module spec: H=32 exercises the H->128 pad + slice
    #    path, and row 1 is fully masked (expected output = -10000 for that row).
    B, S, H = 2, 8, 32
    k1, _ = jax.random.split(jax.random.PRNGKey(0))
    x = jax.random.normal(k1, (B, S, H), dtype=jnp.float32)
    lengths = jnp.array([S, 0], dtype=jnp.int32)
    mask = (jnp.arange(S)[None, :] < lengths[:, None]).astype(jnp.int32)
    out = jax.block_until_ready(max_pooling(x, mask))
    assert out.shape == (B, H) and out.dtype == jnp.float32
    assert jnp.allclose(out, _reference(x, mask), atol=1e-6), "f32 tiny mismatch"

    # 2) small-but-tiled f32 case exercising the (parallel, parallel, arbitrary)
    #    grid with the grouped (tb, 8, th) accumulator.
    x, mask = make_inputs(jax.random.PRNGKey(1), 4, 128, 256, jnp.float32)
    out = jax.block_until_ready(
        max_pooling(x, mask, block_b=4, block_s=64, block_h=128))
    assert jnp.allclose(out, _reference(x, mask), atol=1e-6), "f32 tiled mismatch"

    # 3) native bf16 input (no wrapper upcast; f32 compute in-kernel, bf16 out).
    x, mask = make_inputs(jax.random.PRNGKey(2), 4, 128, 256, jnp.bfloat16)
    out = jax.block_until_ready(
        max_pooling(x, mask, block_b=4, block_s=64, block_h=128))
    assert out.dtype == jnp.bfloat16
    assert jnp.allclose(out.astype(jnp.float32),
                        _reference(x, mask).astype(jnp.float32),
                        atol=1e-2), "bf16 tiled mismatch"

    # 4) odd dims: S not a multiple of 8 (flat accumulator path) and H not a
    #    multiple of 128 (pad + slice), default auto-tiling.
    x, mask = make_inputs(jax.random.PRNGKey(3), 3, 12, 160, jnp.float32)
    out = jax.block_until_ready(max_pooling(x, mask))
    assert out.shape == (3, 160)
    assert jnp.allclose(out, _reference(x, mask), atol=1e-6), "odd-dim mismatch"

    print("KERNEL_OK")
</pallas_src>

<mosaic_0001>
module attributes {stable_mosaic.version = 11 : i64} {
  func.func @_masked_max_kernel(%arg0: i32, %arg1: i32, %arg2: i32, %arg3: memref<2x8x128xf32, #tpu.memory_space<vmem>>, %arg4: memref<2x8x1xi8, #tpu.memory_space<vmem>>, %arg5: memref<2x128xf32, #tpu.memory_space<vmem>>, %arg6: memref<2x8x128xf32, #tpu.memory_space<vmem>>) attributes {dimension_semantics = [#tpu.dimension_semantics<parallel>, #tpu.dimension_semantics<parallel>, #tpu.dimension_semantics<arbitrary>], iteration_bounds = array<i64: 1, 1, 1>, scalar_prefetch = 0 : i64, scratch_operands = 1 : i64, tpu.core_type = #tpu.core_type<tc>, window_params = [{transform_indices = @transform_0, window_bounds = array<i64: 2, 8, 128>}, {transform_indices = @transform_1, window_bounds = array<i64: 2, 8, 1>}, {transform_indices = @transform_2, window_bounds = array<i64: 2, 128>}]} {
    %c0_i32 = arith.constant 0 : i32
    %0 = arith.cmpi eq, %arg2, %c0_i32 : i32
    %1 = arith.extui %0 : i1 to i32
    %c0_i32_0 = arith.constant 0 : i32
    %2 = arith.cmpi ne, %1, %c0_i32_0 : i32
    scf.if %2 {
      %cst_16 = arith.constant 0xFF800000 : f32
      %20 = vector.broadcast %cst_16 : f32 to vector<2x8x128xf32>
      %c0_17 = arith.constant 0 : index
      %c0_18 = arith.constant 0 : index
      %c0_19 = arith.constant 0 : index
      %21 = vector.load %arg6[%c0_17, %c0_18, %c0_19] : memref<2x8x128xf32, #tpu.memory_space<vmem>>, vector<2x8x128xf32>
      tpu.vector_store %arg6[%c0_17, %c0_18, %c0_19], %20 {strides = array<i32>} : memref<2x8x128xf32, #tpu.memory_space<vmem>>, vector<2x8x128xf32>,
    } else {
    }
    %c0 = arith.constant 0 : index
    %c0_1 = arith.constant 0 : index
    %c0_2 = arith.constant 0 : index
    %3 = vector.load %arg3[%c0, %c0_1, %c0_2] : memref<2x8x128xf32, #tpu.memory_space<vmem>>, vector<2x8x128xf32>
    %c0_3 = arith.constant 0 : index
    %c0_4 = arith.constant 0 : index
    %c0_5 = arith.constant 0 : index
    %4 = vector.load %arg4[%c0_3, %c0_4, %c0_5] : memref<2x8x1xi8, #tpu.memory_space<vmem>>, vector<2x8x1xi8>
    %5 = arith.sitofp %4 : vector<2x8x1xi8> to vector<2x8x1xf32>
    %cst = arith.constant 0.000000e+00 : f32
    %6 = vector.broadcast %cst : f32 to vector<2x8x1xf32>
    %7 = arith.cmpf oeq, %5, %6 : vector<2x8x1xf32>
    %cst_6 = arith.constant -1.000000e+04 : f32
    %8 = vector.shape_cast %7 : vector<2x8x1xi1> to vector<2x8x1xi1>
    %9 = vector.broadcast %8 : vector<2x8x1xi1> to vector<2x8x128xi1>
    %10 = vector.broadcast %cst_6 : f32 to vector<2x8x128xf32>
    %11 = arith.select %9, %10, %3 : vector<2x8x128xi1>, vector<2x8x128xf32>
    %12 = vector.shape_cast %11 : vector<2x8x128xf32> to vector<2x1x8x128xf32>
    %c0_7 = arith.constant 0 : index
    %c0_8 = arith.constant 0 : index
    %c0_9 = arith.constant 0 : index
    %13 = vector.load %arg6[%c0_7, %c0_8, %c0_9] : memref<2x8x128xf32, #tpu.memory_space<vmem>>, vector<2x8x128xf32>
    %cst_10 = arith.constant dense<0xFF800000> : vector<2x8x128xf32>
    %14 = vector.multi_reduction <maximumf>, %12, %cst_10 [1] : vector<2x1x8x128xf32> to vector<2x8x128xf32>
    %15 = arith.maximumf %13, %14 : vector<2x8x128xf32>
    %c0_11 = arith.constant 0 : index
    %c0_12 = arith.constant 0 : index
    %c0_13 = arith.constant 0 : index
    %16 = vector.load %arg6[%c0_11, %c0_12, %c0_13] : memref<2x8x128xf32, #tpu.memory_space<vmem>>, vector<2x8x128xf32>
    tpu.vector_store %arg6[%c0_11, %c0_12, %c0_13], %15 {strides = array<i32>} : memref<2x8x128xf32, #tpu.memory_space<vmem>>, vector<2x8x128xf32>,
    %c0_i32_14 = arith.constant 0 : i32
    %17 = arith.cmpi eq, %arg2, %c0_i32_14 : i32
    %18 = arith.extui %17 : i1 to i32
    %c0_i32_15 = arith.constant 0 : i32
    %19 = arith.cmpi ne, %18, %c0_i32_15 : i32
    scf.if %19 {
      %c0_16 = arith.constant 0 : index
      %c0_17 = arith.constant 0 : index
      %c0_18 = arith.constant 0 : index
      %20 = vector.load %arg6[%c0_16, %c0_17, %c0_18] : memref<2x8x128xf32, #tpu.memory_space<vmem>>, vector<2x8x128xf32>
      %cst_19 = arith.constant dense<0xFF800000> : vector<2x128xf32>
      %21 = vector.multi_reduction <maximumf>, %20, %cst_19 [1] : vector<2x8x128xf32> to vector<2x128xf32>
      %c0_20 = arith.constant 0 : index
      %c0_21 = arith.constant 0 : index
      %22 = vector.load %arg5[%c0_20, %c0_21] : memref<2x128xf32, #tpu.memory_space<vmem>>, vector<2x128xf32>
      tpu.vector_store %arg5[%c0_20, %c0_21], %21 {strides = array<i32>} : memref<2x128xf32, #tpu.memory_space<vmem>>, vector<2x128xf32>,
    } else {
    }
    return
  }
  func.func @transform_0(%arg0: i32, %arg1: i32, %arg2: i32) -> (i32, i32, i32) {
    %c0_i32 = arith.constant 0 : i32
    return %arg0, %arg2, %arg1 : i32, i32, i32
  }
  func.func @transform_1(%arg0: i32, %arg1: i32, %arg2: i32) -> (i32, i32, i32) {
    %c0_i32 = arith.constant 0 : i32
    %c0_i32_0 = arith.constant 0 : i32
    return %arg0, %arg2, %c0_i32 : i32, i32, i32
  }
  func.func @transform_2(%arg0: i32, %arg1: i32, %arg2: i32) -> (i32, i32) {
    %c0_i32 = arith.constant 0 : i32
    return %arg0, %arg1 : i32, i32
  }
}

</mosaic_0001>

<bundles_post_ra>
// kernel: tpu_custom_call.1
= control target key start
LH: loop header
LB: loop body
LE: loop exit
PB: predicated region body
PF: predicated region fallthrough
CT: control target
= control target key end

     0   :  { %7 = vsyncpa [#allocation4], 0  ;;  %s203_s0 = inlined_call_operand.hbm [shape: f32[2,8,128], index: 0, kind: input, shape index: {}]   ;;  %s204_s1 = inlined_call_operand.vmem [shape: s8[2,8,1], index: 1, kind: input, shape index: {}]   ;;  %s205_s2 = inlined_call_operand.hbm [shape: f32[2,128], index: 2, kind: output, shape index: {}]  }
   0x1   :  { %8 = vsyncpa [#allocation5], 0  ;;  %s156_s9 = smov [#allocation3]   ;;  %s108_s13 = scalar_lea.hbm %s203_s0, 256 }
   0x2   :  { %s14_s10 = sshll.u32 %s156_s9, 4  ;;  %p109_p0 = scmp.ne.s32.totalorder %s203_s0, %s108_s13  ;;  %s15_s10 = int_to_ptr.vmem [resolvable:$true] %s14_s10 }
   0x3   :  { %p112_p1 = scmp.lt.u32.totalorder %s108_s13, %s203_s0 }
   0x5   :  { %p114_p2 = pnand %p112_p1, %p109_p0 }
   0x7   :  { %117 = shalt.err (!%p114_p2)
}
   0x8   :  { %s118_s18 = scalar_lea.vmem %s15_s10, 256  ;;  %p123_p4 = scmp.lt.s32.totalorder %s15_s10, %s15_s10 }
   0x9   :  { %p119_p3 = scmp.ne.s32.totalorder %s15_s10, %s118_s18  ;;  %p124_p5 = scmp.lt.s32.totalorder %s118_s18, %s118_s18 }
   0xb   :  { %p125_p6 = por %p124_p5, %p123_p4 }
   0xd   :  { %p126_p7 = pnand %p125_p6, %p119_p3 }
   0xf   :  { %129 = shalt.err (!%p126_p7)
}
  0x10   :  { %s157_s19 = smov 128   ;;  %s158_s20 = smov 8  }
  0x11   :  { %20 = dma.hbm_to_vmem [thread:$0]  %s203_s0, 256, %s15_s10, [#allocation4], %s157_s19, %s157_s19, %s158_s20  }
  0x12   :  { %152 = dma.done.wait [#allocation4], 256  }
  0x13   :  { %153 = vsyncadd [#allocation4], 4294967040  ;;  %v159_v0 = vmov 0   ;;  %v99_v1 = vld [vmem:[%s204_s1] sm:$0xf]   ;;  %v33_v12 = vld [vmem:[#allocation3 + $0x8] sm:$0xff] }
  0x14   :  { %107 = vset.pattern.permute.xlu0 %v159_v0  ;;  %v100_v2 = vunpack.c.0.s8 %v99_v1  ;;  %v101_v3 = vunpack.c.1.s8 %v99_v1  ;;  %v32_v8 = vld [vmem:[#allocation3] sm:$0xff]  ;;  %s160_s0 = smov [#allocation6]   ;;  %vm79_vm4 = vcmask 1041409  }
  0x15   :  { %s89_s1 = sshll.u32 %s160_s0, 4  ;;  %s90_s1 = int_to_ptr.vmem [resolvable:$true] %s89_s1 }
  0x16   :  { %v38_v4 = vcvt.s32.f32 %v100_v2  ;;  %v39_v5 = vcvt.s32.f32 %v101_v3  ;;  %s130_s25 = scalar_lea.vmem %s90_s1, 32  ;;  %p135_p9 = scmp.lt.s32.totalorder %s90_s1, %s90_s1 }
  0x17   :  { %p131_p8 = scmp.ne.s32.totalorder %s90_s1, %s130_s25  ;;  %p136_p10 = scmp.lt.s32.totalorder %s130_s25, %s130_s25 }
  0x18   :  { %vm40_vm0 = vcmp.eq.f32.partialorder %v38_v4, 0.0  ;;  %vm41_vm1 = vcmp.eq.f32.partialorder %v39_v5, 0.0 }
  0x19   :  { %v42_v6 = vsel %vm40_vm0, 1, %v159_v0  ;;  %v43_v7 = vsel %vm41_vm1, 1, %v159_v0  ;;  %p137_p11 = por %p136_p10, %p135_p9 }
  0x1a   :  { %45 = vperm.xlu0 %107, %v42_v6  }
  0x1b   :  { %p138_p12 = pnand %p137_p11, %p131_p8 }
  0x1e   :  { %48 = vperm.xlu0 %107, %v43_v7  }
  0x99   :  { %v46_v9 = vpop.permute.xlu0 %45 }
  0x9a   :  { %vm50_vm2 = vcmp.eq.s32.totalorder %v46_v9, 1 }
  0x9b   :  { %v52_v10 = vsel %vm50_vm2, -10000.0, %v32_v8 }
  0x9c   :  { %v65_v11 = vrot.slane %v52_v10, 4 }
  0x9d   :  { %v49_v13 = vpop.permute.xlu0 %48 }
  0x9e   :  { %v66_v14 = vmax.f32 %v52_v10, %v65_v11  ;;  %vm51_vm3 = vcmp.eq.s32.totalorder %v49_v13, 1 }
  0x9f   :  { %v53_v15 = vsel %vm51_vm3, -10000.0, %v33_v12 }
  0xa0   :  { %v67_v16 = vrot.slane %v66_v14, 2  ;;  %v71_v17 = vrot.slane %v53_v15, 4 }
  0xa2   :  { %v68_v18 = vmax.f32 %v66_v14, %v67_v16  ;;  %v72_v19 = vmax.f32 %v53_v15, %v71_v17 }
  0xa4   :  { %v73_v20 = vrot.slane %v72_v19, 2  ;;  %v69_v21 = vrot.slane %v68_v18, 1 }
  0xa6   :  { %v74_v22 = vmax.f32 %v72_v19, %v73_v20  ;;  %v70_v24 = vmax.f32 %v68_v18, %v69_v21 }
  0xa8   :  { %v75_v23 = vrot.slane %v74_v22, 1 }
  0xaa   :  { %v76_v25 = vmax.f32 %v74_v22, %v75_v23 }
  0xac   :  { %v80_v26 = vsel %vm79_vm4, %v76_v25, %v70_v24 }
  0xad   :  { %82 = vst [vmem:[#allocation6] sm:$0x3] %v80_v26 }
  0xae   :  { %141 = shalt.err (!%p138_p12)
}
  0xaf   :  { %s142_s28 = scalar_lea.hbm %s205_s2, 32 }
  0xb0   :  { %p143_p13 = scmp.ne.s32.totalorder %s205_s2, %s142_s28  ;;  %p146_p0 = scmp.lt.u32.totalorder %s142_s28, %s205_s2 }
  0xb2   :  { %p148_p1 = pnand %p146_p0, %p143_p13 }
  0xb4   :  { %151 = shalt.err (!%p148_p1)
}
  0xb5   :  { %92 = dma.vmem_to_hbm [thread:$0]  %s90_s1, 32, %s205_s2, [#allocation5]  }
  0xb6   :  { %154 = dma.done.wait [#allocation5], 32  }
  0xb7   :  { %155 = vsyncadd [#allocation5], 4294967264 }
  0xb8   :  { %96 = vsyncpa [#allocation4], 1 }
  0xb9   :  { %97 = vsyncpa [#allocation5], 1 }

</bundles_post_ra>
